<compile_context>
chip_gen: v5e
topology: v5e:2x2
jax: 0.10.0
libtpu: 0.0.40
codegen_flags: <defaults>
</compile_context>

<pallas_src>
import jax
import jax.numpy as jnp
from jax.experimental import pallas as pl
from jax.experimental.pallas import tpu as pltpu


def aft_full_kernel(x_ref, wqkv_ref, ebias_ref, wm_ref, o_ref):
    ch = ebias_ref.shape[0]

    x = x_ref[...]                                                       # (C, TN) bf16

    # Fused QKV projection: one small-K MXU pass, f32 accumulation.
    qkv = jnp.dot(wqkv_ref[...], x, preferred_element_type=jnp.float32)  # (3ch, TN) f32
    q = qkv[0:ch]                                                        # (ch, TN)
    k = qkv[ch:2 * ch]                                                   # (ch, TN)
    v = qkv[2 * ch:3 * ch]                                               # (ch, TN)

    # Per-pixel max-k shift for overflow safety; cancels between num and den.
    kmax = jnp.max(k, axis=0, keepdims=True)                             # (1, TN)
    ek = jnp.exp(k - kmax)                                               # (ch, TN) f32

    # num[i,n] = sum_j exp(B[i,j]) * (exp(k[j,n]) * v[j,n])
    # den[i,n] = sum_j exp(B[i,j]) *  exp(k[j,n])
    # Two dots sharing the (hoisted, VMEM-resident) exp(B) LHS.
    ekv = (ek * v).astype(ebias_ref.dtype)                               # bf16 MXU operand
    ekb = ek.astype(ebias_ref.dtype)
    num = jnp.dot(ebias_ref[...], ekv, preferred_element_type=jnp.float32)
    den = jnp.dot(ebias_ref[...], ekb, preferred_element_type=jnp.float32)

    # EUP reciprocal + one Newton step (off the VALU, ~1e-7 rel error).
    inv = pl.reciprocal(den, approx=True)
    inv = inv * (2.0 - den * inv)

    y = (q * num * inv).astype(wm_ref.dtype)                             # (ch, TN) bf16

    o_ref[...] = jnp.dot(wm_ref[...], y,
                         preferred_element_type=jnp.float32).astype(o_ref.dtype)


def _vmem_bytes(tile_n, c, ch, act_bytes):
    """Rough per-grid-step VMEM footprint estimate (bytes)."""
    f32 = 4
    x_blk = 2 * c * tile_n * act_bytes                       # double-buffered input block
    o_blk = 2 * c * tile_n * act_bytes                       # double-buffered output block
    params = (3 * ch * c + ch * ch + c * ch) * act_bytes     # single-buffered params
    interm = 12 * ch * tile_n * f32                          # qkv(3ch) + ch-wide f32/bf16 temps
    return x_blk + o_blk + params + interm


def _pick_tile_n(n_pad, bs, c, ch, act_bytes, vmem_budget=40 * 2**20):
    """Largest 128-multiple divisor of n_pad that fits the VMEM budget and
    keeps >= 4 total grid steps (>= 2 per TensorCore for v7x megacore)."""
    candidates = [t for t in (4096, 2048, 1024, 512, 256, 128) if n_pad % t == 0]
    fitting = [t for t in candidates if _vmem_bytes(t, c, ch, act_bytes) <= vmem_budget]
    if not fitting:
        fitting = [min(candidates)]
    pipelined = [t for t in fitting if bs * (n_pad // t) >= 4]
    return max(pipelined) if pipelined else max(fitting)


def aft_full_pallas(x_nchw, wq, wk, wv, pos_bias, wm, *, tile_n=None,
                    act_dtype=jnp.bfloat16):
    """x_nchw: (B, C, H, W). wq/wk/wv: (C//2, C), pos_bias: (C//2, C//2), wm: (C, C//2).

    Returns (B, C, H, W) in act_dtype (bf16 by default — halves the HBM bytes
    at the kernel boundary; cast outside if f32 output is required).
    """
    bs, c, h, w = x_nchw.shape
    ch = c // 2
    n = h * w
    n_pad = ((n + 127) // 128) * 128
    act_bytes = jnp.dtype(act_dtype).itemsize

    # Channels-first: NCHW -> (B, C, N), bf16 at the HBM boundary, pad N to a
    # 128-multiple with zero pixels (per-pixel math is independent; padded
    # columns are sliced off after).
    x = x_nchw.reshape(bs, c, n).astype(act_dtype)
    if n_pad != n:
        x = jnp.pad(x, ((0, 0), (0, 0), (0, n_pad - n)))

    if tile_n is None:
        tile_n = _pick_tile_n(n_pad, bs, c, ch, act_bytes)
    assert n_pad % tile_n == 0 and tile_n % 128 == 0
    grid = (bs, n_pad // tile_n)

    # Hoisted, input-invariant parameter preprocessing.
    wqkv = jnp.concatenate([wq, wk, wv], axis=0).astype(act_dtype)   # (3ch, C)
    ebias = jnp.exp(pos_bias.astype(jnp.float32)).astype(act_dtype)  # (ch, ch) == exp(B)
    wm_c = wm.astype(act_dtype)                                      # (C, ch)

    # Explicit VMEM budgeting: raise the scoped limit (v5e default 16 MiB) but
    # stay well under v7x's 64 MiB physical VMEM.
    vmem_est = _vmem_bytes(tile_n, c, ch, act_bytes)
    vmem_limit = int(min(48 * 2**20, max(32 * 2**20, 2 * vmem_est)))

    out = pl.pallas_call(
        aft_full_kernel,
        out_shape=jax.ShapeDtypeStruct((bs, c, n_pad), act_dtype),
        grid=grid,
        in_specs=[
            # activations: per-(batch, pixel-tile) block, batch dim squeezed
            pl.BlockSpec((pl.Squeezed(), c, tile_n), lambda b, t: (b, 0, t)),
            # parameters: whole-array, constant index_map, single-buffered
            pl.BlockSpec((3 * ch, c), lambda b, t: (0, 0),
                         pipeline_mode=pl.Buffered(1)),               # [Wq;Wk;Wv]
            pl.BlockSpec((ch, ch), lambda b, t: (0, 0),
                         pipeline_mode=pl.Buffered(1)),               # exp(B)
            pl.BlockSpec((c, ch), lambda b, t: (0, 0),
                         pipeline_mode=pl.Buffered(1)),               # Wm
        ],
        out_specs=pl.BlockSpec((pl.Squeezed(), c, tile_n), lambda b, t: (b, 0, t)),
        compiler_params=pltpu.CompilerParams(
            dimension_semantics=("parallel", "parallel"),
            vmem_limit_bytes=vmem_limit),
    )(x, wqkv, ebias, wm_c)

    if n_pad != n:
        out = out[:, :, :n]
    return out.reshape(bs, c, h, w)


def aft_full_ref(x_nchw, wq, wk, wv, pos_bias, wm):
    """Pure-JAX transcription of the PyTorch forward (for verification)."""
    bs, c, h, w = x_nchw.shape
    ch = c // 2
    xf = x_nchw.reshape(bs, c, h * w)
    q = jnp.einsum('oc,bcn->bon', wq, xf)                 # (bs, ch, n)
    k = jnp.einsum('oc,bcn->bon', wk, xf)[None]           # (1, bs, ch, n)
    v = jnp.einsum('oc,bcn->bon', wv, xf)[None]           # (1, bs, ch, n)
    bias = pos_bias.reshape(ch, 1, ch, 1)
    num = jnp.sum(jnp.exp(k + bias) * v, axis=2)          # (ch, bs, n)
    den = jnp.sum(jnp.exp(k + bias), axis=2)              # (ch, bs, n)
    out = num / den
    out = jnp.transpose(out, (1, 0, 2)).reshape(bs, ch, h, w)
    out = q.reshape(bs, ch, h, w) * out
    out = jnp.einsum('oc,bcn->bon', wm, out.reshape(bs, ch, h * w))
    return out.reshape(bs, c, h, w)


if __name__ == "__main__":
    key = jax.random.PRNGKey(0)
    bs, d_model, h, w = 2, 16, 16, 16
    ch = d_model // 2

    k_x, k_q, k_k, k_v, k_m, k_b, k_x2 = jax.random.split(key, 7)
    x = jax.random.normal(k_x, (bs, d_model, h, w), dtype=jnp.float32)

    # Deterministic synthetic parameters (module __init__ gives the shapes):
    wq = jax.random.normal(k_q, (ch, d_model), dtype=jnp.float32) * 0.1   # fc_q 1x1 conv
    wk = jax.random.normal(k_k, (ch, d_model), dtype=jnp.float32) * 0.1   # fc_k 1x1 conv
    wv = jax.random.normal(k_v, (ch, d_model), dtype=jnp.float32) * 0.1   # fc_v 1x1 conv
    wm = jax.random.normal(k_m, (d_model, ch), dtype=jnp.float32) * 0.1   # conv_mask 1x1 conv
    # position_biases is ones in __init__; perturb so the i-dependence of the
    # bias is actually exercised.
    pos_bias = jnp.ones((ch, ch), dtype=jnp.float32) + \
        0.1 * jax.random.normal(k_b, (ch, ch), dtype=jnp.float32)

    # Case 1: N = 256 (128-multiple). Auto tile_n picks 128 -> grid=(2, 2).
    out = aft_full_pallas(x, wq, wk, wv, pos_bias, wm)
    out = jax.block_until_ready(out)
    ref = aft_full_ref(x, wq, wk, wv, pos_bias, wm)
    assert out.shape == (bs, d_model, h, w)
    # bf16 activations/output -> relaxed tolerance (f32 accumulation in matmuls).
    assert jnp.allclose(out.astype(jnp.float32), ref, rtol=2e-2, atol=1e-2), \
        "mismatch vs reference (case 1)"

    # Case 2: ragged N (20x20 = 400 -> padded to 512), exercises the padding path.
    x2 = jax.random.normal(k_x2, (1, d_model, 20, 20), dtype=jnp.float32)
    out2 = aft_full_pallas(x2, wq, wk, wv, pos_bias, wm)
    out2 = jax.block_until_ready(out2)
    ref2 = aft_full_ref(x2, wq, wk, wv, pos_bias, wm)
    assert out2.shape == (1, d_model, 20, 20)
    assert jnp.allclose(out2.astype(jnp.float32), ref2, rtol=2e-2, atol=1e-2), \
        "mismatch vs reference (case 2, ragged N)"

    print("KERNEL_OK")
</pallas_src>

<mosaic_0001>
module attributes {stable_mosaic.version = 11 : i64} {
  func.func @aft_full_kernel(%arg0: i32, %arg1: i32, %arg2: memref<1x16x128xbf16, #tpu.memory_space<vmem>>, %arg3: memref<24x16xbf16, #tpu.memory_space<vmem>>, %arg4: memref<8x8xbf16, #tpu.memory_space<vmem>>, %arg5: memref<16x8xbf16, #tpu.memory_space<vmem>>, %arg6: memref<1x16x128xbf16, #tpu.memory_space<vmem>>) attributes {dimension_semantics = [#tpu.dimension_semantics<parallel>, #tpu.dimension_semantics<parallel>], iteration_bounds = array<i64: 2, 2>, scalar_prefetch = 0 : i64, scratch_operands = 0 : i64, tpu.core_type = #tpu.core_type<tc>, window_params = [{transform_indices = @transform_0, window_bounds = array<i64: 1, 16, 128>}, {pipeline_mode = #tpu.pipeline_mode<synchronous>, transform_indices = @transform_1, window_bounds = array<i64: 24, 16>}, {pipeline_mode = #tpu.pipeline_mode<synchronous>, transform_indices = @transform_2, window_bounds = array<i64: 8, 8>}, {pipeline_mode = #tpu.pipeline_mode<synchronous>, transform_indices = @transform_3, window_bounds = array<i64: 16, 8>}, {transform_indices = @transform_4, window_bounds = array<i64: 1, 16, 128>}]} {
    %c0 = arith.constant 0 : index
    %c0_0 = arith.constant 0 : index
    %c0_1 = arith.constant 0 : index
    %0 = vector.load %arg2[%c0, %c0_0, %c0_1] : memref<1x16x128xbf16, #tpu.memory_space<vmem>>, vector<1x16x128xbf16>
    %1 = vector.shape_cast %0 : vector<1x16x128xbf16> to vector<16x128xbf16>
    %c0_2 = arith.constant 0 : index
    %c0_3 = arith.constant 0 : index
    %2 = vector.load %arg3[%c0_2, %c0_3] : memref<24x16xbf16, #tpu.memory_space<vmem>>, vector<24x16xbf16>
    %cst = arith.constant dense<0.000000e+00> : vector<24x128xf32>
    %3 = tpu.matmul %2, %1, %cst {dimension_numbers = #tpu.dot_dimension_numbers<[1], [0], [0], [1], [0, 0, 1, 1], [], []>} : vector<24x16xbf16>, vector<16x128xbf16>, vector<24x128xf32> -> vector<24x128xf32>
    %4 = vector.extract_strided_slice %3 {offsets = [0, 0], sizes = [8, 128], strides = [1, 1]} : vector<24x128xf32> to vector<8x128xf32>
    %5 = vector.extract_strided_slice %3 {offsets = [8, 0], sizes = [8, 128], strides = [1, 1]} : vector<24x128xf32> to vector<8x128xf32>
    %6 = vector.extract_strided_slice %3 {offsets = [16, 0], sizes = [8, 128], strides = [1, 1]} : vector<24x128xf32> to vector<8x128xf32>
    %cst_4 = arith.constant dense<0xFF800000> : vector<128xf32>
    %7 = vector.multi_reduction <maximumf>, %5, %cst_4 [0] : vector<8x128xf32> to vector<128xf32>
    %8 = vector.shape_cast %7 : vector<128xf32> to vector<1x128xf32>
    %9 = vector.broadcast %8 : vector<1x128xf32> to vector<8x128xf32>
    %10 = arith.subf %5, %9 : vector<8x128xf32>
    %11 = math.exp %10 : vector<8x128xf32>
    %12 = arith.mulf %11, %6 : vector<8x128xf32>
    %13 = arith.truncf %12 : vector<8x128xf32> to vector<8x128xbf16>
    %14 = arith.truncf %11 : vector<8x128xf32> to vector<8x128xbf16>
    %c0_5 = arith.constant 0 : index
    %c0_6 = arith.constant 0 : index
    %15 = vector.load %arg4[%c0_5, %c0_6] : memref<8x8xbf16, #tpu.memory_space<vmem>>, vector<8x8xbf16>
    %cst_7 = arith.constant dense<0.000000e+00> : vector<8x128xf32>
    %16 = tpu.matmul %15, %13, %cst_7 {dimension_numbers = #tpu.dot_dimension_numbers<[1], [0], [0], [1], [0, 0, 1, 1], [], []>} : vector<8x8xbf16>, vector<8x128xbf16>, vector<8x128xf32> -> vector<8x128xf32>
    %c0_8 = arith.constant 0 : index
    %c0_9 = arith.constant 0 : index
    %17 = vector.load %arg4[%c0_8, %c0_9] : memref<8x8xbf16, #tpu.memory_space<vmem>>, vector<8x8xbf16>
    %cst_10 = arith.constant dense<0.000000e+00> : vector<8x128xf32>
    %18 = tpu.matmul %17, %14, %cst_10 {dimension_numbers = #tpu.dot_dimension_numbers<[1], [0], [0], [1], [0, 0, 1, 1], [], []>} : vector<8x8xbf16>, vector<8x128xbf16>, vector<8x128xf32> -> vector<8x128xf32>
    %19 = tpu.reciprocal %18 {approx = true} : vector<8x128xf32> -> vector<8x128xf32>
    %20 = arith.mulf %18, %19 : vector<8x128xf32>
    %cst_11 = arith.constant 2.000000e+00 : f32
    %21 = vector.broadcast %cst_11 : f32 to vector<8x128xf32>
    %22 = arith.subf %21, %20 : vector<8x128xf32>
    %23 = arith.mulf %19, %22 : vector<8x128xf32>
    %24 = arith.mulf %4, %16 : vector<8x128xf32>
    %25 = arith.mulf %24, %23 : vector<8x128xf32>
    %26 = arith.truncf %25 : vector<8x128xf32> to vector<8x128xbf16>
    %c0_12 = arith.constant 0 : index
    %c0_13 = arith.constant 0 : index
    %27 = vector.load %arg5[%c0_12, %c0_13] : memref<16x8xbf16, #tpu.memory_space<vmem>>, vector<16x8xbf16>
    %cst_14 = arith.constant dense<0.000000e+00> : vector<16x128xf32>
    %28 = tpu.matmul %27, %26, %cst_14 {dimension_numbers = #tpu.dot_dimension_numbers<[1], [0], [0], [1], [0, 0, 1, 1], [], []>} : vector<16x8xbf16>, vector<8x128xbf16>, vector<16x128xf32> -> vector<16x128xf32>
    %29 = arith.truncf %28 : vector<16x128xf32> to vector<16x128xbf16>
    %c0_15 = arith.constant 0 : index
    %c0_16 = arith.constant 0 : index
    %c0_17 = arith.constant 0 : index
    %30 = vector.load %arg6[%c0_15, %c0_16, %c0_17] : memref<1x16x128xbf16, #tpu.memory_space<vmem>>, vector<1x16x128xbf16>
    %31 = vector.shape_cast %30 : vector<1x16x128xbf16> to vector<16x128xbf16>
    %32 = vector.shape_cast %29 : vector<16x128xbf16> to vector<1x16x128xbf16>
    tpu.vector_store %arg6[%c0_15, %c0_16, %c0_17], %32 {strides = array<i32>} : memref<1x16x128xbf16, #tpu.memory_space<vmem>>, vector<1x16x128xbf16>,
    return
  }
  func.func @transform_0(%arg0: i32, %arg1: i32) -> (i32, i32, i32) {
    %c0_i32 = arith.constant 0 : i32
    %c0_i32_0 = arith.constant 0 : i32
    return %arg0, %c0_i32, %arg1 : i32, i32, i32
  }
  func.func @transform_1(%arg0: i32, %arg1: i32) -> (i32, i32) {
    %c0_i32 = arith.constant 0 : i32
    %c0_i32_0 = arith.constant 0 : i32
    %c0_i32_1 = arith.constant 0 : i32
    return %c0_i32, %c0_i32_0 : i32, i32
  }
  func.func @transform_2(%arg0: i32, %arg1: i32) -> (i32, i32) {
    %c0_i32 = arith.constant 0 : i32
    %c0_i32_0 = arith.constant 0 : i32
    %c0_i32_1 = arith.constant 0 : i32
    return %c0_i32, %c0_i32_0 : i32, i32
  }
  func.func @transform_3(%arg0: i32, %arg1: i32) -> (i32, i32) {
    %c0_i32 = arith.constant 0 : i32
    %c0_i32_0 = arith.constant 0 : i32
    %c0_i32_1 = arith.constant 0 : i32
    return %c0_i32, %c0_i32_0 : i32, i32
  }
  func.func @transform_4(%arg0: i32, %arg1: i32) -> (i32, i32, i32) {
    %c0_i32 = arith.constant 0 : i32
    %c0_i32_0 = arith.constant 0 : i32
    return %arg0, %c0_i32, %arg1 : i32, i32, i32
  }
}

</mosaic_0001>

<bundles_post_ra>
// kernel: tpu_custom_call.1
= control target key start
LH: loop header
LB: loop body
LE: loop exit
PB: predicated region body
PF: predicated region fallthrough
CT: control target
= control target key end

     0   :  { %9 = vsyncpa [#allocation3], 0  ;;  %s926_s0 = inlined_call_operand.hbm [shape: bf16[2,16,256], index: 0, kind: input, shape index: {}]   ;;  %s927_s1 = inlined_call_operand.vmem [shape: bf16[24,16], index: 1, kind: input, shape index: {}]   ;;  %s928_s2 = inlined_call_operand.vmem [shape: bf16[8,8], index: 2, kind: input, shape index: {}]   ;;  %s929_s3 = inlined_call_operand.vmem [shape: bf16[16,8], index: 3, kind: input, shape index: {}]   ;;  %s930_s4 = inlined_call_operand.hbm [shape: bf16[2,16,256], index: 4, kind: output, shape index: {}]  }
   0x1   :  { %11 = vsyncpa [#allocation3 + $0x1], 0 }
   0x2   :  { %12 = vsyncpa [#allocation4], 0 }
   0x3   :  { %14 = vsyncpa [#allocation4 + $0x1], 0  ;;  %s762_s15 = smov 0   ;;  %s764_s16 = smov 0  }
   0x4   :  { %s766_s17 = smov 0   ;;  %s768_s18 = smov 0  }
   0x5   :  { %s770_s19 = smov 0   ;;  %s772_s20 = smov 0  }
   0x6   :  { %s774_s21 = smov 0   ;;  %s776_s22 = smov 0  }
   0x7 LB: > { %934 = sst [smem:[#allocation8_spill]] %s709_s17  ;;  %s473_s23 = sadd.s32 4294967295, %s729_s22   ;;  %s729_s22 = sphi %s776_s22, %s20_s22   ;;  %s725_s21 = sphi %s774_s21, %s951_s21   ;;  %s721_s20 = sphi %s772_s20, %s950_s20   ;;  %s717_s19 = sphi %s770_s19, %s949_s19   ;;  %s713_s18 = sphi %s768_s18, %s948_s18   ;;  %s709_s17 = sphi %s766_s17, %s943_s17   ;;  %s705_s16 = sphi %s764_s16, %s947_s16   ;;  %s701_s15 = sphi %s762_s15, %s946_s15  }
   0x8   : > { %s474_s24 = sadd.s32 4294967294, %s729_s22   ;;  %s29_s25 = sadd.s32 1, %s721_s20 }
   0x9   : > { %s32_s26 = sadd.s32 1, %s725_s21  ;;  %p30_p0 = scmp.ge.s32.totalorder %s29_s25, 2 }
   0xa   : > { %s41_s27 = sadd.s32 1, %s709_s17  ;;  %p48_p1 = scmp.ne.s32.totalorder %s709_s17, %s705_s16 }
   0xb   : > { %p49_p2 = scmp.eq.s32.totalorder %s729_s22, 0  ;;  %s953_s25 = smov (%p30_p0, %s29_s25), 0 }
   0xc   : > { %935 = sst [smem:[#allocation9_spill]] %s953_s25  ;;  %s955_s26 = smov (!%p30_p0, %s32_s26), %s725_s21 }
   0xd   : > { %s37_s28 = ssub.s32 %s721_s20, %s953_s25  ;;  %p815_p3 = por %p49_p2, %p48_p1 }
   0xe   : > { %p34_p4 = scmp.ge.s32.totalorder %s955_s26, 2  ;;  %p54_p5 = scmp.ne.s32.totalorder %s705_s16, %s701_s15 }
   0xf   : > { %p55_p6 = scmp.eq.s32.totalorder %s473_s23, 0  ;;  %p143_p7 = scmp.eq.s32.totalorder %s473_s23, 3 }
  0x10   : > { %s957_s26 = smov (%p34_p4, %s955_s26), 0  ;;  %p149_p10 = scmp.eq.s32.totalorder %s474_s24, 3 }
  0x11   : > { %937 = sst [smem:[#allocation10_spill]] %s957_s26  ;;  %p823_p8 = por %p55_p6, %p54_p5 }
  0x12   : > { %p827_p9 = por %p143_p7, %p48_p1  ;;  %s36_s6 = ssub.s32 %s725_s21, %s957_s26 }
  0x13   : > { %s38_s7 = sor.u32 %s37_s28, %s36_s6  ;;  %p833_p12 = por %p149_p10, %p54_p5 }
  0x14   : > { %p39_p11 = scmp.eq.s32.totalorder %s38_s7, 0  ;;  %p525_p13 = scmp.lt.s32.totalorder %s729_s22, 4 }
  0x15   : > { %s178_s9 = sand.u32 1, %s709_s17   ;;  %s478_s12 = sshll.u32 %s725_s21, 2 }
  0x16   : > { %s840_s10 = scalar_select %p39_p11, %s709_s17, %s41_s27  }
  0x17   : > { %s477_s11 = sshll.u32 %s178_s9, 3  ;;  %s186_s13 = sadd.s32 %s721_s20, %s478_s12 }
  0x18   : > { %941 = sst [smem:[#allocation11_spill]] %s840_s10  ;;  %s182_s14 = scalar_lea.vmem [#allocation2], %s477_s11 }
  0x19   : > { %s191_s23 = sshll.u32 %s182_s14, 4  ;;  %s479_s26 = sshll.u32 %s186_s13, 2  ;;  %s192_s23 = int_to_ptr.vmem [resolvable:$true] %s191_s23 }
  0x1a   : > { %s188_s6 = scalar_lea.hbm %s926_s0, %s479_s26  ;;  %p518_p0 = pnand %p525_p13, %p815_p3 }
  0x1b   : > { %s189_s7 = sshll.u32 %s188_s6, 4  ;;  %s179_s25 = scalar_lea.sflag [#allocation3], %s178_s9  ;;  %s190_s7 = int_to_ptr.hbm [resolvable:$true] %s189_s7 }
  0x1c   : > { %s731_s27 = smov 128   ;;  %s732_s10 = smov 64  }
  0x1d   : > { %s733_s17 = smov 4   ;;  %p480_p1 = scmp.ge.s32.totalorder %s729_s22, 1 }
  0x1e   : > { %520 = dma.hbm_to_vmem [thread:$0]  (!%p518_p0), %s190_s7, 128, %s192_s23, %s179_s25, %s731_s27, %s732_s10, %s733_s17  }
  0x1f   : > { %p199_p2 = scmp.lt.s32.totalorder %s729_s22, 5 }
  0x21   : > { %p200_p4 = pnand %p480_p1, %p199_p2 }
  0x22   : > { %s852_s11 = sand.u32 (!%p200_p4), 1, %s705_s16  }
  0x23   : > { %203 = sbr.rel (%p200_p4) target bundleno = 508 (0x1fc), region = 36  ;;  %s481_s26 = sshll.u32 (!%p200_p4), %s852_s11, 3 }
  0x24   : > { %s206_s29 = scalar_lea.sflag (!%p200_p4), [#allocation3], %s852_s11  ;;  %s209_s12 = scalar_lea.vmem (!%p200_p4), [#allocation2], %s481_s26 }
  0x28   : > { %692 = dma.done.wait (%p823_p8), %s206_s29, 128  }
  0x29   : > { %694 = vsyncadd (%p823_p8), %s206_s29, 4294967168  ;;  %v505_v0 = vld [vmem:[%s209_s12] sm:$0xff]  ;;  %vm255_vm0 = vcmask 130048   ;;  %vm297_vm1 = vcmask 1043456   ;;  %vm293_vm2 = vcmask 64512   ;;  %s501_s24 = sshll.u32 %s717_s19, 2 }
  0x2a   : > { %v506_v1 = vld [vmem:[%s927_s1] sm:$0xff]  ;;  %269 = vmatpush.bf16.msra.mxu0 %v505_v0  ;;  %v240_v2 = vld [vmem:[%s927_s1 + $0x8] sm:$0xf]  ;;  %s379_s28 = sadd.s32 %s713_s18, %s501_s24  ;;  %s234_s12 = scalar_lea.vmem [#allocation5], %s481_s26 }
  0x2b   : > { %v246_v3 = vunpack.c.l.b16 %v240_v2  ;;  %v292_v22 = vld [vmem:[%s928_s2] sm:$0xf]  ;;  %s502_s6 = sshll.u32 %s379_s28, 2  ;;  %s382_s17 = sshll.u32 %s234_s12, 4  ;;  %s383_s17 = int_to_ptr.vmem [resolvable:$true] %s382_s17 }
  0x2c   : > { %v507_v36 = vld [vmem:[%s929_s3] sm:$0xff]  ;;  %s381_s29 = scalar_lea.hbm %s930_s4, %s502_s6  ;;  %s369_s9 = scalar_lea.sflag [#allocation4], %s852_s11 }
  0x2d   : > { %491 = vmatmul.msk.bf16.vlgmr.msra.gmra.mxu0 %vm255_vm0, %v506_v1  ;;  %v248_v4 = vpack.c.b16 %v246_v3, %v246_v3  ;;  %s384_s25 = sshll.u32 %s381_s29, 4  ;;  %s651_s13 = scalar_lea.hbm %s930_s4, 32  ;;  %s385_s25 = int_to_ptr.hbm [resolvable:$true] %s384_s25 }
  0x2e   : > { %s645_s10 = sshra.s32 %s385_s25, 4  ;;  %s646_s10 = int_to_ptr.hbm [resolvable:$true] %s645_s10 }
  0x2f   : > { %s647_s18 = scalar_lea.hbm %s646_s10, 8  ;;  %p652_p7 = scmp.lt.s32.totalorder %s646_s10, %s930_s4 }
  0x30   : > { %p648_p3 = scmp.ne.s32.totalorder %s646_s10, %s647_s18  ;;  %p653_p8 = scmp.lt.s32.totalorder %s651_s13, %s647_s18 }
  0x32   : > { %p649_p5 = pnand %p648_p3, %p827_p9  ;;  %p654_p10 = por %p653_p8, %p652_p7 }
  0x34   : > { %p650_p6 = pneg %p649_p5 }
  0x36   : > { %p655_p11 = pnand %p654_p10, %p650_p6 }
  0x3d   : > { %492 = vmatmul.msk.bf16.gmra.mxu0 %vm255_vm0, %v248_v4 }
  0xaa   : > { %v271_v5 = vpop.f32.mrf.mxu0 }
  0xb2   : > { %v273_v6 = vpop.f32.mrf.mxu0 }
  0xb3   : > { %v280_v7 = vrot.slane %v273_v6, 4 }
  0xb5   : > { %v281_v8 = vmax.f32 %v273_v6, %v280_v7 }
  0xb7   : > { %v282_v9 = vrot.slane %v281_v8, 2 }
  0xb9   : > { %v283_v10 = vmax.f32 %v281_v8, %v282_v9 }
  0xba   : > { %v276_v11 = vpop.f32.mrf.mxu0 }
  0xbb   : > { %v284_v12 = vrot.slane %v283_v10, 1 }
  0xbd   : > { %v285_v13 = vmax.f32 %v283_v10, %v284_v12 }
  0xbf   : > { %v286_v14 = vsub.f32 %v273_v6, %v285_v13 }
  0xc1   : > { %v287_v15 = vmul.f32 1.442695, %v286_v14 }
  0xc2   : > { %v278_v16 = vpop.f32.mrf.mxu0 }
  0xc3   : > { %597 = vpow2.f32 %v287_v15 }
  0xc9   : > { %v598_v17 = vpop.eup %597 }
  0xca   : > { %v289_v18 = vmul.f32 %v598_v17, %v276_v11  ;;  %v291_v19 = vpack.c.bf16 %v598_v17, %v598_v17 }
  0xcc   : > { %v290_v20 = vpack.c.bf16 %v289_v18, %v289_v18  ;;  %v315_v21 = vsel %vm297_vm1, %v291_v19, 0 }
  0xcd   : > { %324 = vmatpush.bf16.msra.mxu2 %v315_v21 }
  0xce   : > { %v299_v23 = vsel %vm297_vm1, %v290_v20, 0 }
  0xcf   : > { %308 = vmatpush.bf16.msra.mxu1 %v299_v23 }
  0xd0   : > { %494 = vmatmul.msk.bf16.vlgmr.msra.gmra.mxu2 %vm293_vm2, %v292_v22 }
  0xd2   : > { %493 = vmatmul.msk.bf16.vlgmr.msra.gmra.mxu1 %vm293_vm2, %v292_v22 }
 0x14f   : > { %v310_v24 = vpop.f32.mrf.mxu1 }
 0x150   : > { %v334_v31 = vmul.f32 %v310_v24, %v271_v5 }
 0x153   : > { %v326_v25 = vpop.f32.mrf.mxu2 }
 0x154   : > { %599 = vrcp.f32 %v326_v25 }
 0x157   : > { %v312_v26 = vpop.f32.mrf.mxu1 }
 0x15a   : > { %v600_v27 = vpop.eup %599 }
 0x15b   : > { %v331_v28 = vmul.f32 %v600_v27, %v326_v25  ;;  %v328_v29 = vpop.f32.mrf.mxu2 }
 0x15d   : > { %v332_v30 = vsub.f32 2.0, %v331_v28 }
 0x15f   : > { %v333_v32 = vmul.f32 %v600_v27, %v332_v30 }
 0x161   : > { %v335_v33 = vmul.f32 %v334_v31, %v333_v32 }
 0x163   : > { %v336_v34 = vpack.c.bf16 %v335_v33, %v335_v33 }
 0x165   : > { %v348_v35 = vsel %vm297_vm1, %v336_v34, 0 }
 0x166   : > { %357 = vmatpush.bf16.msra.mxu3 %v348_v35 }
 0x169   : > { %499 = vmatmul.msk.bf16.vlgmr.msra.gmra.mxu3 %vm293_vm2, %v507_v36 }
 0x1ec   : > { %v359_v37 = vpop.f32.mrf.mxu3 }
 0x1f4   : > { %v361_v38 = vpop.f32.mrf.mxu3 }
 0x1f5   : > { %v511_v39 = vpack.c.bf16 %v361_v38, %v359_v37 }
 0x1f7   : > { %512 = vst [vmem:[%s234_s12] sm:$0xff] %v511_v39  }
 0x1f8   : > { %658 = shalt.err (!%p655_p11)
}
 0x1f9   : > { %s734_s11 = smov 64   ;;  %s735_s23 = smov 128  }
 0x1fa   : > { %s736_s24 = smov 4  }
 0x1fb   : > { %515 = dma.vmem_to_hbm [thread:$0]  (%p827_p9), %s383_s17, 128, %s385_s25, %s369_s9, %s734_s11, %s735_s23, %s736_s24  }
 0x1fc PF: > { %p526_p13 = scmp.ge.s32.totalorder %s729_s22, 2  ;;  %s399_s28 = sand.u32 1, %s701_s15  }
 0x1fd   : > { %s400_s6 = scalar_lea.sflag [#allocation4], %s399_s28 }
 0x1fe   : > { %p522_p0 = pnand %p526_p13, %p833_p12 }
 0x200   : > { %p523_p1 = pneg %p522_p0 }
 0x202   : > { %696 = dma.done.wait (%p523_p1), %s400_s6, 128  }
 0x203   : > { %698 = vsyncadd (%p523_p1), %s400_s6, 4294967168  ;;  %s20_s22 = sadd.s32 1, %s729_s22   ;;  %s942_s7 = sld [smem:[#allocation8_spill]] }
 0x204   : > { %p17_p2 = scmp.ge.s32.totalorder %s20_s22, 6   ;;  %s943_s17 = sld [smem:[#allocation11_spill]] }
 0x205   : > { %s944_s5 = sld [smem:[#allocation9_spill]]  ;;  %s946_s15 = smov %s705_s16 }
 0x206   : > { %s945_s27 = sld [smem:[#allocation10_spill]]  ;;  %s948_s18 = smov %s721_s20 }
 0x207   : > { %s949_s19 = smov %s725_s21 }
 0x208   :  { %19 = sbr.rel (!%p17_p2) target bundleno = 7 (0x7), region = 81 }
 0x209   : > { %s947_s16 = smov %s942_s7 }
 0x20b   : > { %s950_s20 = smov %s944_s5 }
 0x20c   : > { %s951_s21 = smov %s945_s27 }
 0x20d   :  { %406 = vsyncpa [#allocation3], 1 }
 0x20e   :  { %408 = vsyncpa [#allocation3 + $0x1], 1 }
 0x20f   :  { %409 = vsyncpa [#allocation4], 1 }
 0x210   :  { %411 = vsyncpa [#allocation4 + $0x1], 1 }

</bundles_post_ra>
